<compile_context>
chip_gen: v6e
topology: v6e:2x2x1
jax: 0.10.0
libtpu: 0.0.40
codegen_flags: <defaults>
</compile_context>

<pallas_src>
import functools

import jax
import jax.numpy as jnp
from jax import lax
from jax.experimental import pallas as pl
from jax.experimental.pallas import tpu as pltpu

LANE = 128  # TPU lane width (last-dim vreg tiling)


def channel_attn_kernel(x_ref, w1_ref, w2_ref, o_ref, max_acc, sum_acc, *,
                        inv_hw, hw_valid, hw_tile, n_chunks, needs_mask):
    # x_ref:   (C, hw_tile)  one spatial tile of one batch element
    # w1_ref:  (Cr, C)       first 1x1 conv weight (no bias)
    # w2_ref:  (C, Cr)       second 1x1 conv weight (no bias)
    # o_ref:   (1, C)        sigmoid channel gate, channels on the lane axis
    # max_acc: (C, 128) f32  per-lane running max (lane reduce deferred)
    # sum_acc: (C, 128) f32  per-lane running sum
    t = pl.program_id(1)

    @pl.when(t == 0)
    def _init():
        max_acc[...] = jnp.full_like(max_acc, -jnp.inf)
        sum_acc[...] = jnp.zeros_like(sum_acc)

    # --- Per-tile accumulation: elementwise VPU work on 128-lane chunks.
    # No full-tile f32 temporary and no in-loop cross-lane (XLU) reduction.
    tile_base = t * hw_tile

    @pl.loop(0, n_chunks)
    def _accumulate(k):
        off = pl.multiple_of(k * LANE, LANE)
        chunk = x_ref[:, pl.ds(off, LANE)].astype(jnp.float32)      # (C, 128)
        if needs_mask:
            lane = lax.broadcasted_iota(jnp.int32, chunk.shape, 1)
            valid = (tile_base + off + lane) < hw_valid
            cmax = jnp.where(valid, chunk, -jnp.inf)
            csum = jnp.where(valid, chunk, 0.0)
        else:
            cmax = chunk
            csum = chunk
        max_acc[...] = jnp.maximum(max_acc[...], cmax)
        sum_acc[...] = sum_acc[...] + csum

    # --- Finalize once per batch element: lane reduce + fused SE + sigmoid.
    @pl.when(t == pl.num_programs(1) - 1)
    def _finalize():
        w_dtype = w1_ref.dtype
        max_row = jnp.max(max_acc[...], axis=-1, keepdims=True).T             # (1, C)
        avg_row = (jnp.sum(sum_acc[...], axis=-1, keepdims=True) * inv_hw).T  # (1, C)
        pooled = jnp.concatenate([max_row, avg_row], axis=0).astype(w_dtype)  # (2, C)
        # Fused SE: both pooled vectors share a single matmul pair.
        h = jnp.einsum('bc,rc->br', pooled, w1_ref[...],
                       preferred_element_type=jnp.float32)                    # (2, Cr)
        h = jnp.maximum(h, 0.0).astype(w_dtype)                               # ReLU
        y = jnp.einsum('br,cr->bc', h, w2_ref[...],
                       preferred_element_type=jnp.float32)                    # (2, C)
        logits = jnp.sum(y, axis=0, keepdims=True)                            # (1, C)
        o_ref[...] = jax.nn.sigmoid(logits).astype(o_ref.dtype)


def _physical_vmem_bytes():
    try:
        info = pltpu.get_tpu_info()
        for attr in ("vmem_capacity_bytes", "vmem_bytes"):
            v = getattr(info, attr, None)
            if v:
                return int(v)
    except Exception:
        pass
    return 64 * 1024 * 1024  # conservative fallback (v7x-sized VMEM)


def _default_vmem_limit_bytes():
    # ~70% of physical VMEM: ~90 MiB on 128 MiB parts (v5e/v6e), ~45 MiB on
    # 64 MiB parts (v7x); capped so weights/output/internal scratch always fit.
    return min(int(_physical_vmem_bytes() * 0.70), 96 * 1024 * 1024)


def _x_block_budget_bytes(vmem_limit, c, cr, x_itemsize, w_itemsize, o_itemsize):
    """Per-buffer budget for the (C, hw_tile) x block, coupled to vmem_limit."""
    w_bytes = 2 * 2 * (c * cr) * w_itemsize       # w1 + w2, double-buffered
    o_bytes = 2 * c * o_itemsize                  # output block, double-buffered
    acc_bytes = 2 * c * LANE * 4                  # two (C, 128) f32 accumulators
    internal = 2 * 1024 * 1024                    # Mosaic internal scratch slack
    avail = vmem_limit - w_bytes - o_bytes - acc_bytes - internal
    avail = int(avail * 0.8)                      # ~20% headroom
    return max(avail // 2, c * LANE * x_itemsize)  # //2: x is double-buffered


def _pick_hw_tile(hw, c, x_itemsize, budget_bytes):
    """Largest lane-aligned spatial tile that fits the budget."""
    max_lanes = max(LANE, (budget_bytes // max(1, c * x_itemsize)) // LANE * LANE)
    if hw % LANE == 0:
        if hw <= max_lanes:
            return hw                             # single contiguous (C, HW) block
        total_chunks, cap = hw // LANE, max_lanes // LANE
        best = 1
        for d in range(1, cap + 1):               # largest chunk-count divisor <= cap
            if total_chunks % d == 0:
                best = d
        return best * LANE
    # Unaligned H*W: take the largest aligned tile that fits; the trailing
    # partial tile is masked inside the kernel.
    return min(max_lanes, (hw // LANE) * LANE)


def channel_attention(x_nchw, w1, w2, *, hw_tile=None, vmem_limit_bytes=None):
    """x_nchw: (B, C, H, W); w1: (C//r, C); w2: (C, C//r) -> (B, C, 1, 1)."""
    B, C, H, W = x_nchw.shape
    HW = H * W
    Cr = w1.shape[0]
    x = x_nchw.reshape(B, C, HW)

    if vmem_limit_bytes is None:
        vmem_limit_bytes = _default_vmem_limit_bytes()

    x_item = jnp.dtype(x.dtype).itemsize
    w_item = jnp.dtype(w1.dtype).itemsize

    # Tiny spatial extents: pad up to one lane tile so the chunked accumulator
    # always has at least one aligned 128-lane chunk (pad region is masked).
    hw_data = HW
    if HW < LANE:
        x = jnp.pad(x, ((0, 0), (0, 0), (0, LANE - HW)))
        hw_data = LANE

    if hw_tile is None:
        budget = _x_block_budget_bytes(vmem_limit_bytes, C, Cr,
                                       x_item, w_item, x_item)
        hw_tile = _pick_hw_tile(hw_data, C, x_item, budget)
    assert hw_tile % LANE == 0, "hw_tile must be a multiple of 128"
    assert hw_tile <= hw_data, "hw_tile must not exceed the (padded) H*W"
    num_t = (hw_data + hw_tile - 1) // hw_tile
    needs_mask = (num_t * hw_tile != HW)

    kernel = functools.partial(
        channel_attn_kernel, inv_hw=1.0 / HW, hw_valid=HW, hw_tile=hw_tile,
        n_chunks=hw_tile // LANE, needs_mask=needs_mask)

    # NOTE(v7x megacore): the batch axis carries the "parallel" semantics, so
    # both TensorCores are used only when B >= 2 (and balanced).
    # TODO(synk): for B == 1, shard the spatial-tile axis across cores with a
    # small cross-core max/sum combine.
    out = pl.pallas_call(
        kernel,
        out_shape=jax.ShapeDtypeStruct((B, 1, C), x.dtype),
        grid_spec=pltpu.PrefetchScalarGridSpec(
            num_scalar_prefetch=0,
            grid=(B, num_t),
            in_specs=[
                pl.BlockSpec((None, C, hw_tile), lambda b, t: (b, 0, t)),
                pl.BlockSpec((Cr, C), lambda b, t: (0, 0)),
                pl.BlockSpec((C, Cr), lambda b, t: (0, 0)),
            ],
            out_specs=pl.BlockSpec((None, 1, C), lambda b, t: (b, 0, 0)),
            scratch_shapes=[
                pltpu.VMEM((C, LANE), jnp.float32),   # running per-lane max
                pltpu.VMEM((C, LANE), jnp.float32),   # running per-lane sum
            ],
        ),
        compiler_params=pltpu.CompilerParams(
            dimension_semantics=("parallel", "arbitrary"),
            vmem_limit_bytes=vmem_limit_bytes,
        ),
    )(x, w1, w2)
    return out.reshape(B, C, 1, 1)


def channel_attention_ref(x_nchw, w1, w2):
    """Plain-JAX reference mirroring the PyTorch forward."""
    B, C, H, W = x_nchw.shape
    max_pool = jnp.max(x_nchw, axis=(2, 3))            # (B, C)
    avg_pool = jnp.mean(x_nchw, axis=(2, 3))           # (B, C)

    def se(v):  # v: (B, C)
        h = jnp.maximum(v @ w1.T, 0.0)                 # (B, Cr)
        return h @ w2.T                                # (B, C)

    out = jax.nn.sigmoid(se(max_pool) + se(avg_pool))  # (B, C)
    return out.reshape(B, C, 1, 1)


if __name__ == "__main__":
    B, C, H, W = 2, 4, 16, 16
    reduction = 2
    Cr = C // reduction

    key = jax.random.PRNGKey(0)
    kx, k1, k2 = jax.random.split(key, 3)

    x = jax.random.normal(kx, (B, C, H, W), dtype=jnp.float32)
    # Deterministic synthetic weights for the two bias-free 1x1 convs.
    w1 = jax.random.normal(k1, (Cr, C), dtype=jnp.float32) * (1.0 / C) ** 0.5
    w2 = jax.random.normal(k2, (C, Cr), dtype=jnp.float32) * (1.0 / Cr) ** 0.5

    ref = channel_attention_ref(x, w1, w2)

    # Default tile choice (whole H*W in one block at this toy size).
    out = jax.block_until_ready(channel_attention(x, w1, w2))
    assert out.shape == (B, C, 1, 1)
    assert jnp.allclose(out, ref, atol=1e-5, rtol=1e-5)

    # Force a smaller spatial tile: exercises the multi-step accumulator path
    # (pl.when init / accumulate / finalize across the "arbitrary" grid axis).
    out_tiled = jax.block_until_ready(channel_attention(x, w1, w2, hw_tile=128))
    assert jnp.allclose(out_tiled, ref, atol=1e-5, rtol=1e-5)

    # Non-128-aligned spatial extent: exercises the masked partial-tile path.
    x_odd = jax.random.normal(kx, (B, C, 15, 15), dtype=jnp.float32)
    ref_odd = channel_attention_ref(x_odd, w1, w2)
    out_odd = jax.block_until_ready(channel_attention(x_odd, w1, w2))
    assert jnp.allclose(out_odd, ref_odd, atol=1e-5, rtol=1e-5)

    print("KERNEL_OK")
</pallas_src>

<mosaic_0001>
module attributes {stable_mosaic.version = 11 : i64} {
  func.func @channel_attn_kernel(%arg0: i32, %arg1: i32, %arg2: memref<1x4x256xf32, #tpu.memory_space<vmem>>, %arg3: memref<2x4xf32, #tpu.memory_space<vmem>>, %arg4: memref<4x2xf32, #tpu.memory_space<vmem>>, %arg5: memref<1x1x4xf32, #tpu.memory_space<vmem>>, %arg6: memref<4x128xf32, #tpu.memory_space<vmem>>, %arg7: memref<4x128xf32, #tpu.memory_space<vmem>>) attributes {dimension_semantics = [#tpu.dimension_semantics<parallel>, #tpu.dimension_semantics<arbitrary>], iteration_bounds = array<i64: 2, 1>, scalar_prefetch = 0 : i64, scratch_operands = 2 : i64, tpu.core_type = #tpu.core_type<tc>, window_params = [{transform_indices = @transform_0, window_bounds = array<i64: 1, 4, 256>}, {pipeline_mode = #tpu.pipeline_mode<synchronous>, transform_indices = @transform_1, window_bounds = array<i64: 2, 4>}, {pipeline_mode = #tpu.pipeline_mode<synchronous>, transform_indices = @transform_2, window_bounds = array<i64: 4, 2>}, {transform_indices = @transform_3, window_bounds = array<i64: 1, 1, 4>}]} {
    %c0_i32 = arith.constant 0 : i32
    %0 = arith.cmpi eq, %arg1, %c0_i32 : i32
    %1 = arith.extui %0 : i1 to i32
    %c0_i32_0 = arith.constant 0 : i32
    %2 = arith.cmpi ne, %1, %c0_i32_0 : i32
    scf.if %2 {
      %cst = arith.constant 0xFF800000 : f32
      %7 = vector.broadcast %cst : f32 to vector<4x128xf32>
      %c0 = arith.constant 0 : index
      %c0_5 = arith.constant 0 : index
      %8 = vector.load %arg6[%c0, %c0_5] : memref<4x128xf32, #tpu.memory_space<vmem>>, vector<4x128xf32>
      tpu.vector_store %arg6[%c0, %c0_5], %7 {strides = array<i32>} : memref<4x128xf32, #tpu.memory_space<vmem>>, vector<4x128xf32>,
      %cst_6 = arith.constant 0.000000e+00 : f32
      %9 = vector.broadcast %cst_6 : f32 to vector<4x128xf32>
      %c0_7 = arith.constant 0 : index
      %c0_8 = arith.constant 0 : index
      %10 = vector.load %arg7[%c0_7, %c0_8] : memref<4x128xf32, #tpu.memory_space<vmem>>, vector<4x128xf32>
      tpu.vector_store %arg7[%c0_7, %c0_8], %9 {strides = array<i32>} : memref<4x128xf32, #tpu.memory_space<vmem>>, vector<4x128xf32>,
    } else {
    }
    %c0_i32_1 = arith.constant 0 : i32
    %c2_i32 = arith.constant 2 : i32
    %3 = arith.addi %c0_i32_1, %c2_i32 : i32
    %c1_i32 = arith.constant 1 : i32
    scf.for %arg8 = %c0_i32_1 to %3 step %c1_i32  : i32 {
      %c1_i32_5 = arith.constant 1 : i32
      %7 = arith.muli %arg8, %c1_i32_5 : i32
      %c0_i32_6 = arith.constant 0 : i32
      %8 = arith.addi %c0_i32_6, %7 : i32
      %c128_i32 = arith.constant 128 : i32
      %9 = arith.muli %8, %c128_i32 : i32
      %10 = tpu.assume_multiple %9, 128 : i32
      %c0 = arith.constant 0 : index
      %c0_7 = arith.constant 0 : index
      %11 = arith.index_cast %10 : i32 to index
      %12 = vector.load %arg2[%c0, %c0_7, %11] : memref<1x4x256xf32, #tpu.memory_space<vmem>>, vector<1x4x128xf32>
      %13 = vector.shape_cast %12 : vector<1x4x128xf32> to vector<4x128xf32>
      %c0_8 = arith.constant 0 : index
      %c0_9 = arith.constant 0 : index
      %14 = vector.load %arg6[%c0_8, %c0_9] : memref<4x128xf32, #tpu.memory_space<vmem>>, vector<4x128xf32>
      %15 = arith.maximumf %14, %13 : vector<4x128xf32>
      %c0_10 = arith.constant 0 : index
      %c0_11 = arith.constant 0 : index
      %16 = vector.load %arg6[%c0_10, %c0_11] : memref<4x128xf32, #tpu.memory_space<vmem>>, vector<4x128xf32>
      tpu.vector_store %arg6[%c0_10, %c0_11], %15 {strides = array<i32>} : memref<4x128xf32, #tpu.memory_space<vmem>>, vector<4x128xf32>,
      %c0_12 = arith.constant 0 : index
      %c0_13 = arith.constant 0 : index
      %17 = vector.load %arg7[%c0_12, %c0_13] : memref<4x128xf32, #tpu.memory_space<vmem>>, vector<4x128xf32>
      %18 = arith.addf %17, %13 : vector<4x128xf32>
      %c0_14 = arith.constant 0 : index
      %c0_15 = arith.constant 0 : index
      %19 = vector.load %arg7[%c0_14, %c0_15] : memref<4x128xf32, #tpu.memory_space<vmem>>, vector<4x128xf32>
      tpu.vector_store %arg7[%c0_14, %c0_15], %18 {strides = array<i32>} : memref<4x128xf32, #tpu.memory_space<vmem>>, vector<4x128xf32>,
    }
    %c2_i32_2 = arith.constant 2 : i32
    %c0_i32_3 = arith.constant 0 : i32
    %4 = arith.cmpi eq, %arg1, %c0_i32_3 : i32
    %5 = arith.extui %4 : i1 to i32
    %c0_i32_4 = arith.constant 0 : i32
    %6 = arith.cmpi ne, %5, %c0_i32_4 : i32
    scf.if %6 {
      %c0 = arith.constant 0 : index
      %c0_5 = arith.constant 0 : index
      %7 = vector.load %arg6[%c0, %c0_5] : memref<4x128xf32, #tpu.memory_space<vmem>>, vector<4x128xf32>
      %cst = arith.constant dense<0xFF800000> : vector<4xf32>
      %8 = vector.multi_reduction <maximumf>, %7, %cst [1] : vector<4x128xf32> to vector<4xf32>
      %9 = vector.shape_cast %8 : vector<4xf32> to vector<4x1xf32>
      %10 = tpu.transpose %9, [1, 0] : vector<4x1xf32> -> vector<1x4xf32>
      %c0_6 = arith.constant 0 : index
      %c0_7 = arith.constant 0 : index
      %11 = vector.load %arg7[%c0_6, %c0_7] : memref<4x128xf32, #tpu.memory_space<vmem>>, vector<4x128xf32>
      %cst_8 = arith.constant dense<0.000000e+00> : vector<4xf32>
      %12 = vector.multi_reduction <add>, %11, %cst_8 [1] : vector<4x128xf32> to vector<4xf32>
      %13 = vector.shape_cast %12 : vector<4xf32> to vector<4x1xf32>
      %cst_9 = arith.constant 3.906250e-03 : f32
      %14 = vector.broadcast %cst_9 : f32 to vector<4x1xf32>
      %15 = arith.mulf %13, %14 : vector<4x1xf32>
      %16 = tpu.transpose %15, [1, 0] : vector<4x1xf32> -> vector<1x4xf32>
      %17 = tpu.concatenate %10, %16 in 0 : vector<1x4xf32>, vector<1x4xf32> -> vector<2x4xf32>
      %c0_10 = arith.constant 0 : index
      %c0_11 = arith.constant 0 : index
      %18 = vector.load %arg3[%c0_10, %c0_11] : memref<2x4xf32, #tpu.memory_space<vmem>>, vector<2x4xf32>
      "tpu.trace_start"() <{level = 10 : i32, message = "bc,rc->br"}> : () -> ()
      %cst_12 = arith.constant dense<0.000000e+00> : vector<2x2xf32>
      %19 = tpu.matmul %17, %18, %cst_12 {dimension_numbers = #tpu.dot_dimension_numbers<[1], [1], [0], [0], [0, 0, 1, 0], [], []>} : vector<2x4xf32>, vector<2x4xf32>, vector<2x2xf32> -> vector<2x2xf32>
      "tpu.trace_stop"() : () -> ()
      %cst_13 = arith.constant 0.000000e+00 : f32
      %20 = vector.broadcast %cst_13 : f32 to vector<2x2xf32>
      %21 = arith.maximumf %19, %20 : vector<2x2xf32>
      %c0_14 = arith.constant 0 : index
      %c0_15 = arith.constant 0 : index
      %22 = vector.load %arg4[%c0_14, %c0_15] : memref<4x2xf32, #tpu.memory_space<vmem>>, vector<4x2xf32>
      "tpu.trace_start"() <{level = 10 : i32, message = "br,cr->bc"}> : () -> ()
      %cst_16 = arith.constant dense<0.000000e+00> : vector<2x4xf32>
      %23 = tpu.matmul %21, %22, %cst_16 {dimension_numbers = #tpu.dot_dimension_numbers<[1], [1], [0], [0], [0, 0, 1, 0], [], []>} : vector<2x2xf32>, vector<4x2xf32>, vector<2x4xf32> -> vector<2x4xf32>
      "tpu.trace_stop"() : () -> ()
      %cst_17 = arith.constant dense<0.000000e+00> : vector<4xf32>
      %24 = vector.multi_reduction <add>, %23, %cst_17 [0] : vector<2x4xf32> to vector<4xf32>
      %25 = vector.shape_cast %24 : vector<4xf32> to vector<1x4xf32>
      %26 = arith.negf %25 : vector<1x4xf32>
      %27 = math.exp %26 : vector<1x4xf32>
      %cst_18 = arith.constant 1.000000e+00 : f32
      %28 = vector.broadcast %cst_18 : f32 to vector<1x4xf32>
      %29 = arith.addf %28, %27 : vector<1x4xf32>
      %30 = arith.divf %28, %29 : vector<1x4xf32>
      %c0_19 = arith.constant 0 : index
      %c0_20 = arith.constant 0 : index
      %c0_21 = arith.constant 0 : index
      %31 = vector.load %arg5[%c0_19, %c0_20, %c0_21] : memref<1x1x4xf32, #tpu.memory_space<vmem>>, vector<1x1x4xf32>
      %32 = vector.shape_cast %31 : vector<1x1x4xf32> to vector<1x4xf32>
      %33 = vector.shape_cast %30 : vector<1x4xf32> to vector<1x1x4xf32>
      tpu.vector_store %arg5[%c0_19, %c0_20, %c0_21], %33 {strides = array<i32>} : memref<1x1x4xf32, #tpu.memory_space<vmem>>, vector<1x1x4xf32>,
    } else {
    }
    return
  }
  func.func @transform_0(%arg0: i32, %arg1: i32) -> (i32, i32, i32) {
    %c0_i32 = arith.constant 0 : i32
    %c0_i32_0 = arith.constant 0 : i32
    return %arg0, %c0_i32, %arg1 : i32, i32, i32
  }
  func.func @transform_1(%arg0: i32, %arg1: i32) -> (i32, i32) {
    %c0_i32 = arith.constant 0 : i32
    %c0_i32_0 = arith.constant 0 : i32
    %c0_i32_1 = arith.constant 0 : i32
    return %c0_i32, %c0_i32_0 : i32, i32
  }
  func.func @transform_2(%arg0: i32, %arg1: i32) -> (i32, i32) {
    %c0_i32 = arith.constant 0 : i32
    %c0_i32_0 = arith.constant 0 : i32
    %c0_i32_1 = arith.constant 0 : i32
    return %c0_i32, %c0_i32_0 : i32, i32
  }
  func.func @transform_3(%arg0: i32, %arg1: i32) -> (i32, i32, i32) {
    %c0_i32 = arith.constant 0 : i32
    %c0_i32_0 = arith.constant 0 : i32
    %c0_i32_1 = arith.constant 0 : i32
    return %arg0, %c0_i32, %c0_i32_0 : i32, i32, i32
  }
}

</mosaic_0001>

<bundles_post_ra>
// kernel: tpu_custom_call.1
= control target key start
LH: loop header
LB: loop body
LE: loop exit
PB: predicated region body
PF: predicated region fallthrough
CT: control target
= control target key end

     0   :  { %8 = vsyncpa [#allocation5], 0  ;;  %s984_s0 = inlined_call_operand.hbm [shape: f32[2,4,256], index: 0, kind: input, shape index: {}]   ;;  %s985_s1 = inlined_call_operand.vmem [shape: f32[2,4], index: 1, kind: input, shape index: {}]   ;;  %s986_s2 = inlined_call_operand.vmem [shape: f32[4,2], index: 2, kind: input, shape index: {}]   ;;  %s987_s3 = inlined_call_operand.hbm [shape: f32[2,1,4], index: 3, kind: output, shape index: {}]  }
   0x1   :  { %10 = vsyncpa [#allocation5 + $0x1], 0 }
   0x2   :  { %11 = vsyncpa [#allocation6], 0 }
   0x3   :  { %13 = vsyncpa [#allocation6 + $0x1], 0  ;;  %s833_s12 = smov 0   ;;  %s835_s13 = smov 0  }
   0x4   :  { %s837_s14 = smov 0   ;;  %s839_s15 = smov 0  }
   0x5   :  { %s841_s16 = smov 0   ;;  %s843_s17 = smov 0  }
   0x6 LB: > { %s579_s18 = sadd.s32 4294967295, %s802_s17   ;;  %s580_s19 = sadd.s32 4294967294, %s802_s17   ;;  %s802_s17 = sphi %s843_s17, %s19_s17   ;;  %s798_s16 = sphi %s841_s16, %s999_s16   ;;  %s794_s15 = sphi %s839_s15, %s998_s15   ;;  %s790_s14 = sphi %s837_s14, %s997_s14   ;;  %s786_s13 = sphi %s835_s13, %s996_s13   ;;  %s782_s12 = sphi %s833_s12, %s995_s12  }
   0x7   : > { %s31_s20 = sadd.s32 1, %s798_s16  ;;  %s40_s21 = sadd.s32 1, %s790_s14 }
   0x8   : > { %p33_p0 = scmp.ge.s32.totalorder %s31_s20, 2  ;;  %p47_p1 = scmp.ne.s32.totalorder %s790_s14, %s786_s13 }
   0x9   : > { %p48_p2 = scmp.eq.s32.totalorder %s802_s17, 0  ;;  %p53_p3 = scmp.ne.s32.totalorder %s786_s13, %s782_s12 }
   0xa   : > { %s1001_s20 = smov (%p33_p0, %s31_s20), 0  ;;  %p54_p5 = scmp.eq.s32.totalorder %s579_s18, 0 }
   0xb   : > { %p874_p4 = por %p48_p2, %p47_p1  ;;  %s35_s23 = ssub.s32 %s798_s16, %s1001_s20 }
   0xc   : > { %p119_p6 = scmp.eq.s32.totalorder %s579_s18, 1  ;;  %p38_p7 = scmp.eq.s32.totalorder %s35_s23, 0 }
   0xd   : > { %p880_p8 = por %p54_p5, %p53_p3  ;;  %p125_p10 = scmp.eq.s32.totalorder %s580_s19, 1 }
   0xe   : > { %p884_p9 = por %p119_p6, %p47_p1  ;;  %p625_p13 = scmp.lt.s32.totalorder %s802_s17, 2 }
   0xf   : > { %s889_s26 = scalar_select %p38_p7, %s790_s14, %s40_s21  }
  0x10   : > { %p891_p11 = por %p125_p10, %p53_p3  ;;  %s151_s28 = sand.u32 1, %s790_s14  }
  0x11   : > { %s583_s29 = sshll.u32 %s151_s28, 3  ;;  %s598_s30 = sshll.u32 %s798_s16, 7 }
  0x12   : > { %s991_s27 = scalar_select %p891_p11, 1, 0 }
  0x13   : > { %s163_s6 = scalar_lea.hbm %s984_s0, %s598_s30  ;;  %s155_s7 = scalar_lea.vmem [#allocation4], %s583_s29 }
  0x14   : > { %s165_s8 = sshll.u32 %s155_s7, 4  ;;  %p904_p0 = pnand %p625_p13, %p874_p4  ;;  %s166_s8 = int_to_ptr.vmem [resolvable:$true] %s165_s8 }
  0x15   : > { %p586_p1 = scmp.ge.s32.totalorder %s802_s17, 1  ;;  %p170_p2 = scmp.lt.s32.totalorder %s802_s17, 3 }
  0x16   : > { %s152_s10 = scalar_lea.sflag [#allocation5], %s151_s28  ;;  %p692_p3 = pneg %p904_p0 }
  0x17   : > { %s703_s11 = scalar_lea.vmem %s166_s8, 128  ;;  %s808_s18 = smov [#allocation4]  }
  0x18   : > { %p704_p5 = scmp.ne.s32.totalorder %s166_s8, %s703_s11  ;;  %s708_s19 = sshll.u32 %s808_s18, 4  ;;  %s709_s19 = int_to_ptr.vmem [resolvable:$false] %s708_s19 }
  0x19   : > { %s710_s21 = scalar_lea.vmem %s709_s19, 256  ;;  %p711_p10 = scmp.lt.s32.totalorder %s166_s8, %s709_s19 }
  0x1a   : > { %p706_p6 = pnand %p704_p5, %p692_p3  ;;  %p712_p12 = scmp.lt.s32.totalorder %s710_s21, %s703_s11 }
  0x1c   : > { %p707_p7 = pneg %p706_p6  ;;  %p713_p4 = por %p712_p12, %p711_p10 }
  0x1e   : > { %p714_p13 = pnand %p713_p4, %p707_p7 }
  0x20   : > { %717 = shalt.err (!%p714_p13)
}
  0x21   : > { %620 = dma.hbm_to_vmem [thread:$0]  (!%p904_p0), %s163_s6, 128, %s166_s8, %s152_s10  }
  0x22   : > { %p171_p11 = pnand %p586_p1, %p170_p2 }
  0x23   : > { %s919_s22 = sand.u32 (!%p171_p11), 1, %s786_s13  }
  0x24   : > { %174 = sbr.rel (%p171_p11) target bundleno = 778 (0x30a), region = 32  ;;  %s587_s23 = sshll.u32 (!%p171_p11), %s919_s22, 3 }
  0x25   : > { %s177_s28 = scalar_lea.sflag (!%p171_p11), [#allocation5], %s919_s22  ;;  %s180_s29 = scalar_lea.vmem (!%p171_p11), [#allocation4], %s587_s23 }
  0x29   : > { %773 = dma.done.wait (%p880_p8), %s177_s28, 128  }
  0x2a   : > { %775 = vsyncadd (%p880_p8), %s177_s28, 4294967168  ;;  %v809_v0 = vmov -inf   ;;  %v810_v1 = vmov 0.0   ;;  %s201_s30 = scalar_lea.vmem [#allocation7], %s919_s22  ;;  %s804_s4 = smov 0  }
  0x2b   : > { %207 = vst [vmem:[#allocation2] sm:$0xf] %v809_v0  ;;  %208 = vst [vmem:[#allocation3] sm:$0xf] %v810_v1 }
  0x2c LB: >> { %s588_s5 = sshll.u32 %s806_s4, 7  ;;  %s214_s4 = sadd.s32 1, %s806_s4   ;;  %s806_s4 = sphi %s804_s4, %s214_s4  }
  0x2d   : >> { %s216_s6 = sshra.s32 %s588_s5, 7  ;;  %p211_p8 = scmp.ge.s32.totalorder %s214_s4, 2  }
  0x2e   : >> { %s589_s7 = sshll.u32 %s216_s6, 2  ;;  %vm231_vm0 = vcmask (%p211_p8), 1043456   ;;  %603 = vmatprep.subr.mxu0 (%p211_p8), %v810_v1  ;;  %608 = vmatprep.subr.mxu1 (%p211_p8), %v810_v1  ;;  %v309_v12 = vld [vmem:[%s985_s1] sm:$0x3] (%p211_p8)  ;;  %vm310_vm1 = vcmask (%p211_p8), 31744   ;;  %vm811_vm2 = vmmov (%p211_p8), 0  }
  0x2f   : >> { %s219_s8 = scalar_lea.vmem %s180_s29, %s589_s7 [#allocation4]  ;;  %604 = vmatpush3.xpose.msk.msra.mxu0 (%p211_p8), %vm310_vm1, %v309_v12  ;;  %605 = vmatprep.mubr.msk.f32.mxu0 (%p211_p8), %vm811_vm2, %v810_v1  ;;  %vm307_vm3 = vcmask (%p211_p8), 1040384   ;;  %v388_v19 = vld [vmem:[%s986_s2] sm:$0xf] (%p211_p8)  ;;  %vm389_vm4 = vcmask (%p211_p8), 15360   ;;  %vm466_vm5 = vcmask (%p211_p8), 25600   ;;  %s595_s18 = sshll.u32 (%p211_p8), %s794_s15, 4 }
  0x30   : >> { %v220_v4 = vld [vmem:[%s219_s8] sm:$0xf]  ;;  %610 = vmatprep.mubr.msk.f32.mxu1 (%p211_p8), %vm811_vm2, %v810_v1  ;;  %609 = vmatpush3.xpose.msk.msra.mxu1 (%p211_p8), %vm389_vm4, %v388_v19  ;;  %s495_s19 = sshll.u32 (%p211_p8), %s201_s30, 4  ;;  %vm480_vm6 = vcmask (%p211_p8), 24576   ;;  %s940_s28 = scalar_lea.hbm (%p211_p8), %s987_s3, %s595_s18  ;;  %s496_s19 = int_to_ptr.vmem [resolvable:$true] %s495_s19 }
  0x31   : > { %213 = sbr.rel (!%p211_p8) target bundleno = 44 (0x2c), region = 93  ;;  %s483_s29 = scalar_lea.sflag (%p211_p8), [#allocation6], %s919_s22 }
  0x32   : >> { %v221_v2 = vld [vmem:[#allocation2] sm:$0xf]  ;;  %v224_v3 = vld [vmem:[#allocation3] sm:$0xf]  ;;  %s718_s4 = scalar_lea.vmem (%p211_p8), %s496_s19, 16  ;;  %s812_s5 = smov (%p211_p8), [#allocation7]  }
  0x33   : >> { %v222_v5 = vmax.f32 %v221_v2, %v220_v4  ;;  %v225_v6 = vadd.f32 %v224_v3, %v220_v4  ;;  %p719_p11 = scmp.ne.s32.totalorder (%p211_p8), %s496_s19, %s718_s4  ;;  %s722_s15 = sshll.u32 (%p211_p8), %s812_s5, 4  ;;  %s723_s15 = int_to_ptr.vmem [resolvable:$false] %s722_s15 }
  0x34   : > { %s724_s6 = scalar_lea.vmem (%p211_p8), %s723_s15, 32  ;;  %p725_p1 = scmp.lt.s32.totalorder (%p211_p8), %s496_s19, %s723_s15 }
  0x35   : >> { %223 = vst [vmem:[#allocation2] sm:$0xf] %v222_v5  ;;  %226 = vst [vmem:[#allocation3] sm:$0xf] %v225_v6  ;;  %p720_p12 = pnand (%p211_p8), %p719_p11, %p884_p9  ;;  %p726_p2 = scmp.lt.s32.totalorder (%p211_p8), %s724_s6, %s718_s4 }
  0x37   : > { %p721_p0 = pneg %p720_p12  ;;  %p727_p3 = por %p726_p2, %p725_p1 }
  0x39   : > { %p728_p5 = pnand %p727_p3, %p721_p0 }
  0x3c   : > { %v267_v7 = vld [vmem:[#allocation3] sm:$0xf]  ;;  %v230_v8 = vld [vmem:[#allocation2] sm:$0xf] }
  0x3d   : > { %v268_v9 = vsel %vm231_vm0, %v267_v7, 0.0  ;;  %v232_v10 = vsel %vm231_vm0, %v230_v8, -inf }
  0x3e   : > { %269 = vadd.xlane.f32.xlu0 %v268_v9 }
  0x42   : > { %233 = vmax.xlane.f32.xlu0 %v232_v10 }
  0xc7   : > { %v270_v11 = vpop.xlane.xlu0 %269 }
  0xc8   : > { %v271_v13 = vmul.f32 0.00390625, %v270_v11 }
  0xca   : > { %272 = vxpose.xlu1.b32.start.end [1/1] (short) (narrow) %v271_v13, 8 }
  0xcb   : > { %v234_v14 = vpop.xlane.xlu0 %233 }
  0xce   : > { %235 = vxpose.xlu1.b32.start.end [1/1] (short) (narrow) %v234_v14, 8 }
 0x146   : > { %v288_v15 = vpop.trf.xlu1 }
 0x147   : > { %v305_v16 = vrot.slane %v288_v15, 7 }
 0x14a   : > { %v251_v17 = vpop.trf.xlu1 }
 0x14b   : > { %v308_v18 = vsel %vm307_vm3, %v251_v17, %v305_v16 }
 0x14c   : > { %606 = vmatmul.mubr.msk.f32.vlgmr.msra.gmra.mxu0 %vm310_vm1, %v308_v18 }
 0x20c   : > { %v383_v20 = vpop.f32.mrf.mxu0 }
 0x20d   : > { %v387_v21 = vmax.f32 %v383_v20, 0.0 }
 0x20e   : > { %v607_v22 = vpop.f32.mrf.mxu0 }
 0x20f   : > { %611 = vmatmul.mubr.msk.f32.vlgmr.msra.gmra.mxu1 %vm389_vm4, %v387_v21 }
 0x2cf   : > { %v462_v23 = vpop.f32.mrf.mxu1 }
 0x2d0   : > { %v467_v24 = vsel %vm466_vm5, %v462_v23, 0.0 }
 0x2d1   : > { %v468_v25 = vrot.slane %v467_v24, 4  ;;  %v612_v26 = vpop.f32.mrf.mxu1 }
 0x2d3   : > { %v469_v27 = vadd.f32 %v468_v25, %v467_v24 }
 0x2d5   : > { %v470_v28 = vrot.slane %v469_v27, 2 }
 0x2d7   : > { %v471_v29 = vadd.f32 %v470_v28, %v469_v27 }
 0x2d9   : > { %v472_v30 = vrot.slane %v471_v29, 1 }
 0x2db   : > { %v473_v31 = vadd.f32 %v472_v30, %v471_v29 }
 0x2dd   : > { %v594_v32 = vmul.f32 -1.442695, %v473_v31 }
 0x2df   : > { %686 = vpow2.f32 %v594_v32 }
 0x2ec   : > { %v687_v33 = vpop.eup %686 }
 0x2ed   : > { %v477_v34 = vadd.f32 1.0, %v687_v33 }
 0x2ef   : > { %688 = vrcp.f32 %v477_v34 }
 0x2fc   : > { %v689_v35 = vpop.eup %688 }
 0x2fd   : > { %481 = vst.msk [vmem:[%s201_s30] sm:$0x1] %vm480_vm6, %v689_v35 }
 0x2fe   : > { %731 = shalt.err (!%p728_p5)
}
 0x2ff   : > { %s732_s30 = scalar_lea.hbm %s940_s28, 16  ;;  %s736_s8 = scalar_lea.hbm %s987_s3, 32 }
 0x300   : > { %p733_p6 = scmp.ne.s32.totalorder %s940_s28, %s732_s30  ;;  %p737_p4 = scmp.lt.s32.totalorder %s940_s28, %s987_s3 }
 0x301   : > { %p738_p13 = scmp.lt.s32.totalorder %s736_s8, %s732_s30 }
 0x302   : > { %p734_p7 = pnand %p733_p6, %p884_p9 }
 0x303   : > { %p739_p8 = por %p738_p13, %p737_p4 }
 0x304   : > { %p735_p10 = pneg %p734_p7 }
 0x306   : > { %p740_p11 = pnand %p739_p8, %p735_p10 }
 0x308   : > { %743 = shalt.err (!%p740_p11)
}
 0x309   : > { %615 = dma.vmem_to_hbm [thread:$0]  (%p884_p9), %s496_s19, 16, %s940_s28, %s483_s29  }
 0x30a PF: > { %s507_s10 = sand.u32 1, %s782_s12   ;;  %p993_p12 = scmp.ne.s32.totalorder %s991_s27, 0 }
 0x30b   : > { %p994_p0 = scmp.ge.s32.totalorder %s802_s17, 2  ;;  %s508_s11 = scalar_lea.sflag [#allocation6], %s507_s10 }
 0x30d   : > { %p622_p1 = pnand %p994_p0, %p993_p12 }
 0x30f   : > { %p623_p2 = pneg %p622_p1 }
 0x311   : > { %777 = dma.done.wait (%p623_p2), %s508_s11, 16  }
 0x312   : > { %779 = vsyncadd (%p623_p2), %s508_s11, 4294967280  ;;  %s19_s17 = sadd.s32 1, %s802_s17   ;;  %s995_s12 = smov %s786_s13 }
 0x313   : > { %p16_p3 = scmp.ge.s32.totalorder %s19_s17, 4   ;;  %s996_s13 = smov %s790_s14 }
 0x314   : > { %s997_s14 = smov %s889_s26  ;;  %s998_s15 = smov %s798_s16 }
 0x315   : > { %s999_s16 = smov %s1001_s20  ;;  %18 = sbr.rel (!%p16_p3) target bundleno = 6 (0x6), region = 104 }
 0x31a   :  { %512 = vsyncpa [#allocation5], 1 }
 0x31b   :  { %514 = vsyncpa [#allocation5 + $0x1], 1 }
 0x31c   :  { %515 = vsyncpa [#allocation6], 1 }
 0x31d   :  { %517 = vsyncpa [#allocation6 + $0x1], 1 }

</bundles_post_ra>
